<compile_context>
chip_gen: v6e
topology: v6e:2x2x1
jax: 0.10.0
libtpu: 0.0.40
codegen_flags: <defaults>
</compile_context>

<pallas_src>
import functools

import jax
import jax.numpy as jnp
from jax.experimental import pallas as pl
from jax.experimental.pallas import tpu as pltpu


def _round_up(n, m):
    return ((n + m - 1) // m) * m


def _tpu_defaults():
    """(tile_cap, vmem_budget_bytes, num_tensorcores) for the local chip."""
    vmem_bytes = 128 * 1024 * 1024
    try:
        info = pltpu.get_tpu_info()
        vmem_bytes = int(getattr(info, "vmem_capacity_bytes", vmem_bytes))
    except Exception:
        pass
    if vmem_bytes <= 64 * 1024 * 1024:
        # v7x-like: 64 MiB VMEM per TC, 2 TensorCores per chip.
        return 512, 40 * 1024 * 1024, 2
    # v5e / v6e: 128 MiB VMEM, single TensorCore.
    return 1024, 64 * 1024 * 1024, 1


def _weight_spec(shape):
    """Whole-array, grid-invariant weight block; single-buffered when supported."""
    index_map = lambda g: (0, 0)
    if hasattr(pl, "Buffered"):
        try:
            return pl.BlockSpec(shape, index_map, pipeline_mode=pl.Buffered(1))
        except TypeError:
            pass
    return pl.BlockSpec(shape, index_map)


def _make_kernel(n_w, n_u, col_offsets, col_pads, eps, negative_slope, mxu_dtype):
    """Builds the Pallas kernel body for a given layer count / padded layout."""

    def leaky(v):
        return jnp.where(v >= 0, v, negative_slope * v)

    def kernel(x_ref, wall_ref, *rest):
        ut_refs = rest[:n_u]
        o_ref = rest[n_u]

        x_f32 = x_ref[...].astype(jnp.float32)  # (TILE_B, d0_pad); padded cols are 0.

        # eps * ||x||^2 per row (padded columns of x are zero -> exact).
        # Statement order relative to the matmuls is irrelevant: the LLO
        # scheduler co-issues this XLU reduce under the MXU pushes on its own.
        quad = eps * jnp.sum(x_f32 * x_f32, axis=1, keepdims=True)

        # One fused projection of x against all stacked, pre-transposed W_k.
        xproj = jnp.dot(x_ref[...].astype(mxu_dtype), wall_ref[...],
                        preferred_element_type=jnp.float32)

        def proj(k):
            off = col_offsets[k]
            return xproj[:, off:off + col_pads[k]]   # static, 128-aligned slice

        # z = leaky_relu(x @ W0.T)
        z = leaky(proj(0))

        # hidden layers: z = x @ Wk.T + (z @ softplus(Uk).T) * negative_slope
        for li in range(1, n_w - 1):
            z = proj(li) + jnp.dot(z.astype(mxu_dtype), ut_refs[li - 1][...],
                                   preferred_element_type=jnp.float32) * negative_slope
            z = leaky(z)

        # final layer: z = x @ W[-1].T + z @ softplus(U[-1]).T
        z = proj(n_w - 1) + jnp.dot(z.astype(mxu_dtype), ut_refs[n_u - 1][...],
                                    preferred_element_type=jnp.float32)

        # relu(z) + eps * sum(x^2, axis=1, keepdims=True)
        o_ref[...] = (jnp.maximum(z, 0.0) + quad).astype(o_ref.dtype)

    return kernel


def pack_params(Ws, Us, *, mxu_dtype=jnp.bfloat16):
    """Batch-invariant weight packing; call ONCE, not per forward step.

    Returns (w_all, ut_tuple, out_dims):
      w_all    : (d0_pad, sum(col_pads))   stacked, pre-transposed, zero-padded W_k
      ut_tuple : tuple of (col_pads[i], col_pads[i+1])  softplus(U_i).T, zero-padded
      out_dims : tuple of unpadded output widths (layer_sizes[1:])
    """
    n_w, n_u = len(Ws), len(Us)
    assert n_w >= 2 and n_u == n_w - 1, "need at least two W layers"
    d0 = int(Ws[0].shape[1])
    out_dims = tuple(int(W.shape[0]) for W in Ws)

    d0_pad = _round_up(d0, 128)
    col_pads = [_round_up(d, 128) for d in out_dims]
    col_offsets = [0]
    for p in col_pads[:-1]:
        col_offsets.append(col_offsets[-1] + p)
    n_all = sum(col_pads)

    w_all = jnp.zeros((d0_pad, n_all), jnp.float32)
    for k, W in enumerate(Ws):
        w_all = w_all.at[:d0, col_offsets[k]:col_offsets[k] + out_dims[k]].set(
            W.T.astype(jnp.float32))
    w_all = w_all.astype(mxu_dtype)

    ut_list = []
    for i, U in enumerate(Us):
        ut = jnp.zeros((col_pads[i], col_pads[i + 1]), jnp.float32)
        ut = ut.at[:out_dims[i], :out_dims[i + 1]].set(
            jax.nn.softplus(U.astype(jnp.float32)).T)
        ut_list.append(ut.astype(mxu_dtype))

    return w_all, tuple(ut_list), out_dims


def posdef_icnn_forward_packed(x, w_all, ut_list, *, out_dims, eps=0.1,
                               negative_slope=0.05, mxu_dtype=jnp.bfloat16,
                               out_dtype=jnp.float32, tile_b=None):
    """Pallas-backed forward pass of PosDefICNN from pre-packed weights.

    x : (batch, layer_sizes[0]) float32/bfloat16
    returns (batch, layer_sizes[-1]) in out_dtype
    """
    n_u = len(ut_list)
    n_w = n_u + 1
    assert len(out_dims) == n_w
    batch, d0 = x.shape
    d0_pad = int(w_all.shape[0])
    n_all = int(w_all.shape[1])

    col_pads = [_round_up(d, 128) for d in out_dims]
    col_offsets = [0]
    for p in col_pads[:-1]:
        col_offsets.append(col_offsets[-1] + p)
    assert n_all == sum(col_pads)

    # ---- generation-aware tiling -------------------------------------------
    tile_cap, vmem_budget, num_cores = _tpu_defaults()
    if tile_b is not None:
        tile_cap = int(tile_b)

    x_item = jnp.dtype(x.dtype).itemsize
    out_item = jnp.dtype(out_dtype).itemsize
    w_item = jnp.dtype(mxu_dtype).itemsize
    w_bytes = w_all.size * w_item + sum(u.size * w_item for u in ut_list)

    def footprint(tb):
        in_buf = 2 * tb * d0_pad * x_item                # double-buffered x tile
        out_buf = 2 * tb * col_pads[-1] * out_item       # double-buffered output tile
        xproj = tb * n_all * 4                           # f32 fused projection
        zbuf = 2 * tb * max(col_pads) * 4                # z chain intermediates (f32)
        return in_buf + out_buf + xproj + zbuf + w_bytes

    # Number of batch tiles: honor the tile cap, give dual-TC chips >= 2 tiles,
    # and grow tile count until the VMEM footprint fits the budget.
    n_tiles = max(pl.cdiv(batch, tile_cap), 1)
    if num_cores > 1 and batch >= 8 * num_cores:
        n_tiles = max(n_tiles, num_cores)
    while True:
        tile_b_eff = max(8, _round_up(pl.cdiv(batch, n_tiles), 8))
        if tile_b_eff <= 8 or footprint(tile_b_eff) <= vmem_budget:
            break
        n_tiles += 1
    b_pad = tile_b_eff * n_tiles

    vmem_limit = int(min(vmem_budget,
                         max((footprint(tile_b_eff) * 5) // 4, 32 * 1024 * 1024)))

    # ---- input padding (only when actually needed) ---------------------------
    # Lane-dense x (d0 % 128 == 0) with an aligned batch goes straight through:
    # no extra HBM pad pass for a bandwidth-bound kernel.
    if d0 != d0_pad or batch != b_pad:
        x_in = jnp.pad(x, ((0, b_pad - batch), (0, d0_pad - d0)))
    else:
        x_in = x

    kernel = _make_kernel(n_w, n_u, tuple(col_offsets), tuple(col_pads),
                          eps, negative_slope, mxu_dtype)

    grid = (n_tiles,)
    in_specs = ([pl.BlockSpec((tile_b_eff, d0_pad), lambda g: (g, 0)),
                 _weight_spec((d0_pad, n_all))]
                + [_weight_spec((col_pads[i], col_pads[i + 1])) for i in range(n_u)])
    out_spec = pl.BlockSpec((tile_b_eff, col_pads[-1]), lambda g: (g, 0))

    out_pad = pl.pallas_call(
        kernel,
        out_shape=jax.ShapeDtypeStruct((b_pad, col_pads[-1]), out_dtype),
        grid=grid,
        in_specs=in_specs,
        out_specs=out_spec,
        compiler_params=pltpu.CompilerParams(
            dimension_semantics=("parallel",),     # dual-TC chips shard the batch
            vmem_limit_bytes=vmem_limit),
    )(x_in, w_all, *ut_list)

    return out_pad[:batch, :out_dims[-1]]


def posdef_icnn_forward(x, Ws, Us, *, eps=0.1, negative_slope=0.05,
                        mxu_dtype=jnp.bfloat16, out_dtype=jnp.float32,
                        tile_b=None):
    """Convenience one-shot wrapper (packs weights per call; prefer pack_params
    + posdef_icnn_forward_packed in a training/eval loop)."""
    w_all, ut_list, out_dims = pack_params(Ws, Us, mxu_dtype=mxu_dtype)
    return posdef_icnn_forward_packed(
        x, w_all, ut_list, out_dims=out_dims, eps=eps,
        negative_slope=negative_slope, mxu_dtype=mxu_dtype,
        out_dtype=out_dtype, tile_b=tile_b)


def _kaiming_uniform(key, shape, fan_in):
    # nn.init.kaiming_uniform_(W, a=sqrt(5)) -> U(-1/sqrt(fan_in), 1/sqrt(fan_in))
    bound = 1.0 / jnp.sqrt(jnp.float32(fan_in))
    return jax.random.uniform(key, shape, jnp.float32, -bound, bound)


def init_params(key, layer_sizes):
    d0 = layer_sizes[0]
    n_w = len(layer_sizes) - 1
    n_u = len(layer_sizes) - 2
    keys = jax.random.split(key, n_w + n_u)
    Ws = [
        _kaiming_uniform(keys[k], (layer_sizes[k + 1], d0), d0)
        for k in range(n_w)
    ]
    Us = [
        _kaiming_uniform(keys[n_w + i], (layer_sizes[i + 2], layer_sizes[i + 1]),
                         layer_sizes[i + 1])
        for i in range(n_u)
    ]
    return Ws, Us


def reference_forward(x, Ws, Us, eps=0.1, negative_slope=0.05):
    """Pure-JAX reference mirroring the PyTorch forward."""
    def leaky(v):
        return jnp.where(v >= 0, v, negative_slope * v)

    z = leaky(x @ Ws[0].T)
    for W, U in zip(Ws[1:-1], Us[:-1]):
        z = x @ W.T + (z @ jax.nn.softplus(U).T) * negative_slope
        z = leaky(z)
    z = x @ Ws[-1].T + z @ jax.nn.softplus(Us[-1]).T
    return jnp.maximum(z, 0.0) + eps * jnp.sum(x * x, axis=1, keepdims=True)


if __name__ == "__main__":
    # Small shapes consistent with the module: layer_sizes = [in, h1, h2, out]
    layer_sizes = [16, 32, 32, 8]
    batch = 8
    eps, negative_slope = 0.1, 0.05

    key = jax.random.PRNGKey(0)
    kx, kp = jax.random.split(key)
    x = jax.random.normal(kx, (batch, layer_sizes[0]), jnp.float32)
    Ws, Us = init_params(kp, layer_sizes)

    ref = reference_forward(x, Ws, Us, eps=eps, negative_slope=negative_slope)

    # --- full-precision MXU path: tight numerical check ----------------------
    w_all_f32, ut_f32, out_dims = pack_params(Ws, Us, mxu_dtype=jnp.float32)
    fwd_f32 = jax.jit(functools.partial(
        posdef_icnn_forward_packed, out_dims=out_dims, eps=eps,
        negative_slope=negative_slope, mxu_dtype=jnp.float32,
        out_dtype=jnp.float32))
    out_f32 = jax.block_until_ready(fwd_f32(x, w_all_f32, ut_f32))
    assert out_f32.shape == (batch, layer_sizes[-1])
    assert jnp.allclose(out_f32, ref, atol=1e-4, rtol=1e-4), "f32 path mismatch"

    # --- bf16 MXU path (default fast path): weights packed once, jit reuses ---
    w_all_bf, ut_bf, out_dims = pack_params(Ws, Us, mxu_dtype=jnp.bfloat16)
    fwd_bf16 = jax.jit(functools.partial(
        posdef_icnn_forward_packed, out_dims=out_dims, eps=eps,
        negative_slope=negative_slope, mxu_dtype=jnp.bfloat16,
        out_dtype=jnp.float32))
    out_bf16 = jax.block_until_ready(fwd_bf16(x, w_all_bf, ut_bf))
    assert out_bf16.shape == (batch, layer_sizes[-1])
    assert jnp.allclose(out_bf16, ref, atol=5e-2, rtol=5e-2), "bf16 path mismatch"

    print("KERNEL_OK")
</pallas_src>

<mosaic_0001>
module attributes {stable_mosaic.version = 11 : i64} {
  func.func @kernel(%arg0: i32, %arg1: memref<8x128xf32, #tpu.memory_space<vmem>>, %arg2: memref<128x384xf32, #tpu.memory_space<vmem>>, %arg3: memref<128x128xf32, #tpu.memory_space<vmem>>, %arg4: memref<128x128xf32, #tpu.memory_space<vmem>>, %arg5: memref<8x128xf32, #tpu.memory_space<vmem>>) attributes {dimension_semantics = [#tpu.dimension_semantics<parallel>], iteration_bounds = array<i64: 1>, scalar_prefetch = 0 : i64, scratch_operands = 0 : i64, tpu.core_type = #tpu.core_type<tc>, window_params = [{transform_indices = @transform_0, window_bounds = array<i64: 8, 128>}, {pipeline_mode = #tpu.pipeline_mode<synchronous>, transform_indices = @transform_1, window_bounds = array<i64: 128, 384>}, {pipeline_mode = #tpu.pipeline_mode<synchronous>, transform_indices = @transform_2, window_bounds = array<i64: 128, 128>}, {pipeline_mode = #tpu.pipeline_mode<synchronous>, transform_indices = @transform_3, window_bounds = array<i64: 128, 128>}, {transform_indices = @transform_4, window_bounds = array<i64: 8, 128>}]} {
    %c0 = arith.constant 0 : index
    %c0_0 = arith.constant 0 : index
    %0 = vector.load %arg1[%c0, %c0_0] : memref<8x128xf32, #tpu.memory_space<vmem>>, vector<8x128xf32>
    %1 = arith.mulf %0, %0 : vector<8x128xf32>
    %cst = arith.constant dense<0.000000e+00> : vector<8xf32>
    %2 = vector.multi_reduction <add>, %1, %cst [1] : vector<8x128xf32> to vector<8xf32>
    %3 = vector.shape_cast %2 : vector<8xf32> to vector<8x1xf32>
    %cst_1 = arith.constant 1.000000e-01 : f32
    %4 = vector.broadcast %cst_1 : f32 to vector<8x1xf32>
    %5 = arith.mulf %4, %3 : vector<8x1xf32>
    %c0_2 = arith.constant 0 : index
    %c0_3 = arith.constant 0 : index
    %6 = vector.load %arg1[%c0_2, %c0_3] : memref<8x128xf32, #tpu.memory_space<vmem>>, vector<8x128xf32>
    %c0_4 = arith.constant 0 : index
    %c0_5 = arith.constant 0 : index
    %7 = vector.load %arg2[%c0_4, %c0_5] : memref<128x384xf32, #tpu.memory_space<vmem>>, vector<128x384xf32>
    %cst_6 = arith.constant dense<0.000000e+00> : vector<8x384xf32>
    %8 = tpu.matmul %6, %7, %cst_6 {dimension_numbers = #tpu.dot_dimension_numbers<[1], [0], [0], [1], [0, 0, 1, 1], [], []>} : vector<8x128xf32>, vector<128x384xf32>, vector<8x384xf32> -> vector<8x384xf32>
    %9 = vector.extract_strided_slice %8 {offsets = [0, 0], sizes = [8, 128], strides = [1, 1]} : vector<8x384xf32> to vector<8x128xf32>
    %cst_7 = arith.constant 0.000000e+00 : f32
    %10 = vector.broadcast %cst_7 : f32 to vector<8x128xf32>
    %11 = arith.cmpf oge, %9, %10 : vector<8x128xf32>
    %cst_8 = arith.constant 5.000000e-02 : f32
    %12 = vector.broadcast %cst_8 : f32 to vector<8x128xf32>
    %13 = arith.mulf %12, %9 : vector<8x128xf32>
    %14 = arith.select %11, %9, %13 : vector<8x128xi1>, vector<8x128xf32>
    %15 = vector.extract_strided_slice %8 {offsets = [0, 128], sizes = [8, 128], strides = [1, 1]} : vector<8x384xf32> to vector<8x128xf32>
    %c0_9 = arith.constant 0 : index
    %c0_10 = arith.constant 0 : index
    %16 = vector.load %arg3[%c0_9, %c0_10] : memref<128x128xf32, #tpu.memory_space<vmem>>, vector<128x128xf32>
    %cst_11 = arith.constant dense<0.000000e+00> : vector<8x128xf32>
    %17 = tpu.matmul %14, %16, %cst_11 {dimension_numbers = #tpu.dot_dimension_numbers<[1], [0], [0], [1], [0, 0, 1, 1], [], []>} : vector<8x128xf32>, vector<128x128xf32>, vector<8x128xf32> -> vector<8x128xf32>
    %cst_12 = arith.constant 5.000000e-02 : f32
    %18 = vector.broadcast %cst_12 : f32 to vector<8x128xf32>
    %19 = arith.mulf %17, %18 : vector<8x128xf32>
    %20 = arith.addf %15, %19 : vector<8x128xf32>
    %cst_13 = arith.constant 0.000000e+00 : f32
    %21 = vector.broadcast %cst_13 : f32 to vector<8x128xf32>
    %22 = arith.cmpf oge, %20, %21 : vector<8x128xf32>
    %cst_14 = arith.constant 5.000000e-02 : f32
    %23 = vector.broadcast %cst_14 : f32 to vector<8x128xf32>
    %24 = arith.mulf %23, %20 : vector<8x128xf32>
    %25 = arith.select %22, %20, %24 : vector<8x128xi1>, vector<8x128xf32>
    %26 = vector.extract_strided_slice %8 {offsets = [0, 256], sizes = [8, 128], strides = [1, 1]} : vector<8x384xf32> to vector<8x128xf32>
    %c0_15 = arith.constant 0 : index
    %c0_16 = arith.constant 0 : index
    %27 = vector.load %arg4[%c0_15, %c0_16] : memref<128x128xf32, #tpu.memory_space<vmem>>, vector<128x128xf32>
    %cst_17 = arith.constant dense<0.000000e+00> : vector<8x128xf32>
    %28 = tpu.matmul %25, %27, %cst_17 {dimension_numbers = #tpu.dot_dimension_numbers<[1], [0], [0], [1], [0, 0, 1, 1], [], []>} : vector<8x128xf32>, vector<128x128xf32>, vector<8x128xf32> -> vector<8x128xf32>
    %29 = arith.addf %26, %28 : vector<8x128xf32>
    %cst_18 = arith.constant 0.000000e+00 : f32
    %30 = vector.broadcast %cst_18 : f32 to vector<8x128xf32>
    %31 = arith.maximumf %29, %30 : vector<8x128xf32>
    %32 = vector.broadcast %5 : vector<8x1xf32> to vector<8x128xf32>
    %33 = arith.addf %31, %32 : vector<8x128xf32>
    %c0_19 = arith.constant 0 : index
    %c0_20 = arith.constant 0 : index
    %34 = vector.load %arg5[%c0_19, %c0_20] : memref<8x128xf32, #tpu.memory_space<vmem>>, vector<8x128xf32>
    tpu.vector_store %arg5[%c0_19, %c0_20], %33 {strides = array<i32>} : memref<8x128xf32, #tpu.memory_space<vmem>>, vector<8x128xf32>,
    return
  }
  func.func @transform_0(%arg0: i32) -> (i32, i32) {
    %c0_i32 = arith.constant 0 : i32
    %c0_i32_0 = arith.constant 0 : i32
    return %arg0, %c0_i32 : i32, i32
  }
  func.func @transform_1(%arg0: i32) -> (i32, i32) {
    %c0_i32 = arith.constant 0 : i32
    %c0_i32_0 = arith.constant 0 : i32
    %c0_i32_1 = arith.constant 0 : i32
    return %c0_i32, %c0_i32_0 : i32, i32
  }
  func.func @transform_2(%arg0: i32) -> (i32, i32) {
    %c0_i32 = arith.constant 0 : i32
    %c0_i32_0 = arith.constant 0 : i32
    %c0_i32_1 = arith.constant 0 : i32
    return %c0_i32, %c0_i32_0 : i32, i32
  }
  func.func @transform_3(%arg0: i32) -> (i32, i32) {
    %c0_i32 = arith.constant 0 : i32
    %c0_i32_0 = arith.constant 0 : i32
    %c0_i32_1 = arith.constant 0 : i32
    return %c0_i32, %c0_i32_0 : i32, i32
  }
  func.func @transform_4(%arg0: i32) -> (i32, i32) {
    %c0_i32 = arith.constant 0 : i32
    %c0_i32_0 = arith.constant 0 : i32
    return %arg0, %c0_i32 : i32, i32
  }
}

</mosaic_0001>

<bundles_post_ra>
// kernel: posdef_icnn_forward_packed.1
= control target key start
LH: loop header
LB: loop body
LE: loop exit
PB: predicated region body
PF: predicated region fallthrough
CT: control target
= control target key end

     0   :  { %9 = vsyncpa [#allocation3], 0  ;;  %s816_s0 = inlined_call_operand.vmem [shape: f32[8,128], index: 0, kind: input, shape index: {}]   ;;  %s817_s1 = inlined_call_operand.hbm [shape: f32[128,384], index: 1, kind: input, shape index: {}]   ;;  %s818_s2 = inlined_call_operand.hbm [shape: f32[128,128], index: 2, kind: input, shape index: {}]   ;;  %s819_s3 = inlined_call_operand.hbm [shape: f32[128,128], index: 3, kind: input, shape index: {}]   ;;  %s820_s4 = inlined_call_operand.hbm [shape: f32[8,128], index: 4, kind: output, shape index: {}]  }
   0x1   :  { %10 = vsyncpa [#allocation6], 0 }
   0x2   :  { %11 = vsyncpa [#allocation4], 0  ;;  %s705_s15 = smov [#allocation5]  }
   0x3   :  { %s31_s16 = sshll.u32 %s705_s15, 4  ;;  %s32_s16 = int_to_ptr.vmem [resolvable:$true] %s31_s16 }
   0x4   :  { %s627_s17 = scalar_lea.vmem %s32_s16, 2048  ;;  %p632_p1 = scmp.lt.s32.totalorder %s32_s16, %s32_s16 }
   0x5   :  { %p628_p0 = scmp.ne.s32.totalorder %s32_s16, %s627_s17  ;;  %p633_p2 = scmp.lt.s32.totalorder %s627_s17, %s627_s17 }
   0x7   :  { %p634_p3 = por %p633_p2, %p632_p1 }
   0x9   :  { %p635_p4 = pnand %p634_p3, %p628_p0 }
   0xb   :  { %638 = shalt.err (!%p635_p4)
}
   0xc   :  { %s706_s18 = smov 128   ;;  %s707_s19 = smov 8  }
   0xd   :  { %37 = dma.hbm_to_vmem [thread:$0]  %s818_s2, 2048, %s32_s16, [#allocation6], %s706_s18, %s706_s18, %s707_s19  }
   0xe   :  { %s708_s22 = smov [#allocation2]  }
   0xf   :  { %s19_s23 = sshll.u32 %s708_s22, 4  ;;  %s20_s23 = int_to_ptr.vmem [resolvable:$true] %s19_s23 }
  0x10   :  { %s647_s24 = scalar_lea.vmem %s20_s23, 6144  ;;  %p652_p6 = scmp.lt.s32.totalorder %s20_s23, %s20_s23 }
  0x11   :  { %p648_p5 = scmp.ne.s32.totalorder %s20_s23, %s647_s24  ;;  %p653_p7 = scmp.lt.s32.totalorder %s647_s24, %s647_s24 }
  0x13   :  { %p654_p8 = por %p653_p7, %p652_p6 }
  0x15   :  { %p655_p9 = pnand %p654_p8, %p648_p5 }
  0x17   :  { %658 = shalt.err (!%p655_p9)
}
  0x18   :  { %s709_s25 = smov 384   ;;  %s710_s26 = smov 24  }
  0x19   :  { %25 = dma.hbm_to_vmem [thread:$0]  %s817_s1, 6144, %s20_s23, [#allocation3], %s709_s25, %s709_s25, %s710_s26  }
  0x1a   :  { %s711_s29 = smov [#allocation7]  }
  0x1b   :  { %s43_s30 = sshll.u32 %s711_s29, 4  ;;  %s44_s30 = int_to_ptr.vmem [resolvable:$true] %s43_s30 }
  0x1c   :  { %s667_s2 = scalar_lea.vmem %s44_s30, 2048  ;;  %p672_p11 = scmp.lt.s32.totalorder %s44_s30, %s44_s30 }
  0x1d   :  { %p668_p10 = scmp.ne.s32.totalorder %s44_s30, %s667_s2  ;;  %p673_p12 = scmp.lt.s32.totalorder %s667_s2, %s667_s2 }
  0x1f   :  { %p674_p13 = por %p673_p12, %p672_p11 }
  0x21   :  { %p675_p0 = pnand %p674_p13, %p668_p10 }
  0x23   :  { %678 = shalt.err (!%p675_p0)
}
  0x24   :  { %49 = dma.hbm_to_vmem [thread:$0]  %s819_s3, 2048, %s44_s30, [#allocation6], %s706_s18, %s706_s18, %s707_s19  }
  0x25   :  { %699 = dma.done.wait [#allocation3], 6144  }
  0x26   :  { %700 = vsyncadd [#allocation3], 4294961152 }
  0x27   :  { %701 = dma.done.wait [#allocation6], 4096  }
  0x28   :  { %702 = vsyncadd [#allocation6], 4294963200  ;;  %v712_v0 = vmov 0.0   ;;  %v110_v1 = vld [vmem:[#allocation2 + $0x170] sm:$0xff]  ;;  %v109_v2 = vld [vmem:[#allocation2 + $0x168] sm:$0xff]  ;;  %vm713_vm0 = vmmov 0  }
  0x29   :  { %176 = vmatprep.mubr.f32.mxu0 %v712_v0  ;;  %504 = vmatprep.subr.mxu1 %v712_v0  ;;  %v107_v3 = vld [vmem:[#allocation2 + $0x158] sm:$0xff]  ;;  %v106_v4 = vld [vmem:[#allocation2 + $0x150] sm:$0xff]  ;;  %v104_v5 = vld [vmem:[#allocation2 + $0x140] sm:$0xff] }
  0x2a   :  { %112 = vmatprep.subr.mxu0 %v110_v1  ;;  %v103_v6 = vld [vmem:[#allocation2 + $0x138] sm:$0xff]  ;;  %v101_v7 = vld [vmem:[#allocation2 + $0x128] sm:$0xff]  ;;  %v100_v8 = vld [vmem:[#allocation2 + $0x120] sm:$0xff]  ;;  %536 = vmatprep.mubr.msk.f32.mxu1 %vm713_vm0, %v712_v0 }
  0x2b   :  { %113 = vmatpush1.msra.mxu0 %v109_v2  ;;  %v98_v9 = vld [vmem:[#allocation2 + $0x110] sm:$0xff]  ;;  %v97_v10 = vld [vmem:[#allocation2 + $0x108] sm:$0xff]  ;;  %v95_v11 = vld [vmem:[#allocation2 + $0xf8] sm:$0xff] }
  0x2c   :  { %114 = vmatprep.subr.mxu0 %v107_v3  ;;  %v94_v12 = vld [vmem:[#allocation2 + $0xf0] sm:$0xff]  ;;  %v92_v13 = vld [vmem:[#allocation2 + $0xe0] sm:$0xff]  ;;  %v91_v14 = vld [vmem:[#allocation2 + $0xd8] sm:$0xff] }
  0x2d   :  { %115 = vmatpush1.msra.mxu0 %v106_v4  ;;  %v89_v15 = vld [vmem:[#allocation2 + $0xc8] sm:$0xff]  ;;  %v88_v16 = vld [vmem:[#allocation2 + $0xc0] sm:$0xff]  ;;  %v86_v17 = vld [vmem:[#allocation2 + $0xb0] sm:$0xff] }
  0x2e   :  { %116 = vmatprep.subr.mxu0 %v104_v5  ;;  %v85_v18 = vld [vmem:[#allocation2 + $0xa8] sm:$0xff]  ;;  %v83_v19 = vld [vmem:[#allocation2 + $0x98] sm:$0xff]  ;;  %v82_v20 = vld [vmem:[#allocation2 + $0x90] sm:$0xff] }
  0x2f   :  { %117 = vmatpush1.msra.mxu0 %v103_v6  ;;  %v80_v21 = vld [vmem:[#allocation2 + $0x80] sm:$0xff]  ;;  %v79_v22 = vld [vmem:[#allocation2 + $0x78] sm:$0xff]  ;;  %v77_v23 = vld [vmem:[#allocation2 + $0x68] sm:$0xff] }
  0x30   :  { %118 = vmatprep.subr.mxu0 %v101_v7  ;;  %v76_v24 = vld [vmem:[#allocation2 + $0x60] sm:$0xff]  ;;  %v74_v25 = vld [vmem:[#allocation2 + $0x50] sm:$0xff]  ;;  %v73_v26 = vld [vmem:[#allocation2 + $0x48] sm:$0xff] }
  0x31   :  { %119 = vmatpush1.msra.mxu0 %v100_v8  ;;  %v71_v27 = vld [vmem:[#allocation2 + $0x38] sm:$0xff]  ;;  %v70_v28 = vld [vmem:[#allocation2 + $0x30] sm:$0xff]  ;;  %v68_v29 = vld [vmem:[#allocation2 + $0x20] sm:$0xff] }
  0x32   :  { %120 = vmatprep.subr.mxu0 %v98_v9  ;;  %v67_v30 = vld [vmem:[#allocation2 + $0x18] sm:$0xff]  ;;  %v65_v31 = vld [vmem:[#allocation2 + $0x8] sm:$0xff]  ;;  %v64_v32 = vld [vmem:[#allocation2] sm:$0xff] }
  0x33   :  { %121 = vmatpush1.msra.mxu0 %v97_v10  ;;  %v754_v33 = vld [vmem:[%s816_s0] sm:$0xff]  ;;  %v271_v34 = vld [vmem:[#allocation5 + $0x78] sm:$0xff]  ;;  %v270_v35 = vld [vmem:[#allocation5 + $0x70] sm:$0xff]  ;;  %s714_s0 = smov [#allocation8]  }
  0x34   :  { %122 = vmatprep.subr.mxu0 %v95_v11  ;;  %v269_v36 = vld [vmem:[#allocation5 + $0x68] sm:$0xff]  ;;  %v268_v37 = vld [vmem:[#allocation5 + $0x60] sm:$0xff]  ;;  %v267_v38 = vld [vmem:[#allocation5 + $0x58] sm:$0xff]  ;;  %s443_s7 = sshll.u32 %s714_s0, 4  ;;  %s444_s7 = int_to_ptr.vmem [resolvable:$true] %s443_s7 }
  0x35   :  { %123 = vmatpush1.msra.mxu0 %v94_v12  ;;  %v266_v39 = vld [vmem:[#allocation5 + $0x50] sm:$0xff]  ;;  %v265_v40 = vld [vmem:[#allocation5 + $0x48] sm:$0xff]  ;;  %v264_v41 = vld [vmem:[#allocation5 + $0x40] sm:$0xff]  ;;  %s679_s8 = scalar_lea.vmem %s444_s7, 128  ;;  %p684_p2 = scmp.lt.s32.totalorder %s444_s7, %s444_s7 }
  0x36   :  { %124 = vmatprep.subr.mxu0 %v92_v13  ;;  %v263_v42 = vld [vmem:[#allocation5 + $0x38] sm:$0xff]  ;;  %v262_v43 = vld [vmem:[#allocation5 + $0x30] sm:$0xff]  ;;  %v261_v44 = vld [vmem:[#allocation5 + $0x28] sm:$0xff]  ;;  %p680_p1 = scmp.ne.s32.totalorder %s444_s7, %s679_s8  ;;  %p685_p3 = scmp.lt.s32.totalorder %s679_s8, %s679_s8 }
  0x37   :  { %125 = vmatpush1.msra.mxu0 %v91_v14  ;;  %v260_v45 = vld [vmem:[#allocation5 + $0x20] sm:$0xff]  ;;  %v259_v46 = vld [vmem:[#allocation5 + $0x18] sm:$0xff]  ;;  %v258_v47 = vld [vmem:[#allocation5 + $0x10] sm:$0xff] }
  0x38   :  { %126 = vmatprep.subr.mxu0 %v89_v15  ;;  %v257_v48 = vld [vmem:[#allocation5 + $0x8] sm:$0xff]  ;;  %v256_v49 = vld [vmem:[#allocation5] sm:$0xff]  ;;  %v111_v50 = vld [vmem:[#allocation2 + $0x178] sm:$0xff]  ;;  %p686_p4 = por %p685_p3, %p684_p2 }
  0x39   :  { %127 = vmatpush1.msra.mxu0 %v88_v16  ;;  %v108_v51 = vld [vmem:[#allocation2 + $0x160] sm:$0xff]  ;;  %505 = vmatpush3.msra.mxu1 %v111_v50  ;;  %v105_v52 = vld [vmem:[#allocation2 + $0x148] sm:$0xff]  ;;  %v102_v53 = vld [vmem:[#allocation2 + $0x130] sm:$0xff] }
  0x3a   :  { %128 = vmatprep.subr.mxu0 %v86_v17  ;;  %506 = vmatprep.subr.mxu1 %v712_v0  ;;  %v99_v54 = vld [vmem:[#allocation2 + $0x118] sm:$0xff]  ;;  %v96_v55 = vld [vmem:[#allocation2 + $0x100] sm:$0xff]  ;;  %v93_v56 = vld [vmem:[#allocation2 + $0xe8] sm:$0xff]  ;;  %p687_p5 = pnand %p686_p4, %p680_p1 }
  0x3b   :  { %129 = vmatpush1.msra.mxu0 %v85_v18  ;;  %507 = vmatpush3.msra.mxu1 %v108_v51  ;;  %v90_v57 = vld [vmem:[#allocation2 + $0xd0] sm:$0xff]  ;;  %v87_v58 = vld [vmem:[#allocation2 + $0xb8] sm:$0xff]  ;;  %v84_v59 = vld [vmem:[#allocation2 + $0xa0] sm:$0xff] }
  0x3c   :  { %130 = vmatprep.subr.mxu0 %v83_v19  ;;  %508 = vmatprep.subr.mxu1 %v712_v0  ;;  %v81_v60 = vld [vmem:[#allocation2 + $0x88] sm:$0xff]  ;;  %v78_v61 = vld [vmem:[#allocation2 + $0x70] sm:$0xff]  ;;  %v75_v62 = vld [vmem:[#allocation2 + $0x58] sm:$0xff] }
  0x3d   :  { %131 = vmatpush1.msra.mxu0 %v82_v20  ;;  %509 = vmatpush3.msra.mxu1 %v105_v52  ;;  %v72_v63 = vld [vmem:[#allocation2 + $0x40] sm:$0xff]  ;;  %v69_v1 = vld [vmem:[#allocation2 + $0x28] sm:$0xff]  ;;  %v66_v2 = vld [vmem:[#allocation2 + $0x10] sm:$0xff] }
  0x3e   :  { %132 = vmatprep.subr.mxu0 %v80_v21  ;;  %510 = vmatprep.subr.mxu1 %v712_v0  ;;  %v362_v3 = vld [vmem:[#allocation7 + $0x78] sm:$0xff]  ;;  %v361_v4 = vld [vmem:[#allocation7 + $0x70] sm:$0xff]  ;;  %v360_v5 = vld [vmem:[#allocation7 + $0x68] sm:$0xff] }
  0x3f   :  { %133 = vmatpush1.msra.mxu0 %v79_v22  ;;  %511 = vmatpush3.msra.mxu1 %v102_v53  ;;  %v359_v6 = vld [vmem:[#allocation7 + $0x60] sm:$0xff]  ;;  %v358_v7 = vld [vmem:[#allocation7 + $0x58] sm:$0xff]  ;;  %v357_v8 = vld [vmem:[#allocation7 + $0x50] sm:$0xff]  ;;  %v60_v22 = vmul.f32 %v754_v33, %v754_v33 }
  0x40   :  { %134 = vmatprep.subr.mxu0 %v77_v23  ;;  %512 = vmatprep.subr.mxu1 %v712_v0  ;;  %v356_v9 = vld [vmem:[#allocation7 + $0x48] sm:$0xff]  ;;  %v355_v10 = vld [vmem:[#allocation7 + $0x40] sm:$0xff]  ;;  %v354_v11 = vld [vmem:[#allocation7 + $0x38] sm:$0xff] }
  0x41   :  { %135 = vmatpush1.msra.mxu0 %v76_v24  ;;  %513 = vmatpush3.msra.mxu1 %v99_v54  ;;  %v353_v12 = vld [vmem:[#allocation7 + $0x30] sm:$0xff]  ;;  %v352_v13 = vld [vmem:[#allocation7 + $0x28] sm:$0xff]  ;;  %v351_v14 = vld [vmem:[#allocation7 + $0x20] sm:$0xff] }
  0x42   :  { %136 = vmatprep.subr.mxu0 %v74_v25  ;;  %514 = vmatprep.subr.mxu1 %v712_v0  ;;  %v350_v18 = vld [vmem:[#allocation7 + $0x18] sm:$0xff]  ;;  %v349_v19 = vld [vmem:[#allocation7 + $0x10] sm:$0xff]  ;;  %v348_v20 = vld [vmem:[#allocation7 + $0x8] sm:$0xff] }
  0x43   :  { %137 = vmatpush1.msra.mxu0 %v73_v26  ;;  %515 = vmatpush3.msra.mxu1 %v96_v55  ;;  %v347_v21 = vld [vmem:[#allocation7] sm:$0xff] }
  0x44   :  { %138 = vmatprep.subr.mxu0 %v71_v27  ;;  %516 = vmatprep.subr.mxu1 %v712_v0 }
  0x45   :  { %139 = vmatpush1.msra.mxu0 %v70_v28  ;;  %517 = vmatpush3.msra.mxu1 %v93_v56 }
  0x46   :  { %140 = vmatprep.subr.mxu0 %v68_v29  ;;  %518 = vmatprep.subr.mxu1 %v712_v0 }
  0x47   :  { %141 = vmatpush1.msra.mxu0 %v67_v30  ;;  %519 = vmatpush3.msra.mxu1 %v90_v57 }
  0x48   :  { %142 = vmatprep.subr.mxu0 %v65_v31  ;;  %520 = vmatprep.subr.mxu1 %v712_v0 }
  0x49   :  { %143 = vmatpush1.msra.mxu0 %v64_v32  ;;  %521 = vmatpush3.msra.mxu1 %v87_v58 }
  0x4a   :  { %177 = vmatmul.mubr.f32.vlgmr.msra.gmra.mxu0 %v754_v33  ;;  %539 = vmatprep.subr.mxu0 %v712_v0 }
  0x4b   :  { %540 = vmatpush3.msra.mxu0 %v271_v34  ;;  %571 = vmatprep.mubr.msk.f32.mxu0 %vm713_vm0, %v712_v0 }
  0x4c   :  { %541 = vmatprep.subr.mxu0 %v712_v0  ;;  %522 = vmatprep.subr.mxu1 %v712_v0 }
  0x4d   :  { %542 = vmatpush3.msra.mxu0 %v270_v35  ;;  %523 = vmatpush3.msra.mxu1 %v84_v59 }
  0x4e   :  { %543 = vmatprep.subr.mxu0 %v712_v0  ;;  %524 = vmatprep.subr.mxu1 %v712_v0 }
  0x4f   :  { %544 = vmatpush3.msra.mxu0 %v269_v36  ;;  %525 = vmatpush3.msra.mxu1 %v81_v60 }
  0x50   :  { %545 = vmatprep.subr.mxu0 %v712_v0  ;;  %526 = vmatprep.subr.mxu1 %v712_v0 }
  0x51   :  { %546 = vmatpush3.msra.mxu0 %v268_v37  ;;  %527 = vmatpush3.msra.mxu1 %v78_v61 }
  0x52   :  { %547 = vmatprep.subr.mxu0 %v712_v0  ;;  %528 = vmatprep.subr.mxu1 %v712_v0 }
  0x53   :  { %548 = vmatpush3.msra.mxu0 %v267_v38  ;;  %529 = vmatpush3.msra.mxu1 %v75_v62 }
  0x54   :  { %549 = vmatprep.subr.mxu0 %v712_v0  ;;  %530 = vmatprep.subr.mxu1 %v712_v0 }
  0x55   :  { %550 = vmatpush3.msra.mxu0 %v266_v39  ;;  %531 = vmatpush3.msra.mxu1 %v72_v63 }
  0x56   :  { %551 = vmatprep.subr.mxu0 %v712_v0  ;;  %532 = vmatprep.subr.mxu1 %v712_v0 }
  0x57   :  { %552 = vmatpush3.msra.mxu0 %v265_v40  ;;  %533 = vmatpush3.msra.mxu1 %v69_v1 }
  0x58   :  { %553 = vmatprep.subr.mxu0 %v712_v0  ;;  %534 = vmatprep.subr.mxu1 %v712_v0 }
  0x59   :  { %554 = vmatpush3.msra.mxu0 %v264_v41  ;;  %535 = vmatpush3.msra.mxu1 %v66_v2 }
  0x5a   :  { %555 = vmatprep.subr.mxu0 %v712_v0  ;;  %537 = vmatmul.mubr.f32.vlgmr.msra.gmra.mxu1 %v754_v33 }
  0x5b   :  { %556 = vmatpush3.msra.mxu0 %v263_v42  ;;  %574 = vmatprep.subr.mxu1 %v712_v0 }
  0x5c   :  { %557 = vmatprep.subr.mxu0 %v712_v0  ;;  %575 = vmatpush3.msra.mxu1 %v362_v3 }
  0x5d   :  { %558 = vmatpush3.msra.mxu0 %v262_v43  ;;  %606 = vmatprep.mubr.msk.f32.mxu1 %vm713_vm0, %v712_v0 }
  0x5e   :  { %559 = vmatprep.subr.mxu0 %v712_v0  ;;  %576 = vmatprep.subr.mxu1 %v712_v0 }
  0x5f   :  { %560 = vmatpush3.msra.mxu0 %v261_v44  ;;  %577 = vmatpush3.msra.mxu1 %v361_v4 }
  0x60   :  { %561 = vmatprep.subr.mxu0 %v712_v0  ;;  %578 = vmatprep.subr.mxu1 %v712_v0 }
  0x61   :  { %562 = vmatpush3.msra.mxu0 %v260_v45  ;;  %579 = vmatpush3.msra.mxu1 %v360_v5 }
  0x62   :  { %563 = vmatprep.subr.mxu0 %v712_v0  ;;  %580 = vmatprep.subr.mxu1 %v712_v0 }
  0x63   :  { %564 = vmatpush3.msra.mxu0 %v259_v46  ;;  %581 = vmatpush3.msra.mxu1 %v359_v6 }
  0x64   :  { %565 = vmatprep.subr.mxu0 %v712_v0  ;;  %582 = vmatprep.subr.mxu1 %v712_v0 }
  0x65   :  { %566 = vmatpush3.msra.mxu0 %v258_v47  ;;  %583 = vmatpush3.msra.mxu1 %v358_v7 }
  0x66   :  { %567 = vmatprep.subr.mxu0 %v712_v0  ;;  %584 = vmatprep.subr.mxu1 %v712_v0 }
  0x67   :  { %568 = vmatpush3.msra.mxu0 %v257_v48  ;;  %585 = vmatpush3.msra.mxu1 %v357_v8 }
  0x68   :  { %569 = vmatprep.subr.mxu0 %v712_v0  ;;  %586 = vmatprep.subr.mxu1 %v712_v0 }
  0x69   :  { %570 = vmatpush3.msra.mxu0 %v256_v49  ;;  %587 = vmatpush3.msra.mxu1 %v356_v9 }
  0x6a   :  { %588 = vmatprep.subr.mxu1 %v712_v0  ;;  %61 = vadd.xlane.f32.xlu0 %v60_v22 }
  0x6b   :  { %589 = vmatpush3.msra.mxu1 %v355_v10 }
  0x6c   :  { %590 = vmatprep.subr.mxu1 %v712_v0 }
  0x6d   :  { %591 = vmatpush3.msra.mxu1 %v354_v11 }
  0x6e   :  { %592 = vmatprep.subr.mxu1 %v712_v0 }
  0x6f   :  { %593 = vmatpush3.msra.mxu1 %v353_v12 }
  0x70   :  { %594 = vmatprep.subr.mxu1 %v712_v0 }
  0x71   :  { %595 = vmatpush3.msra.mxu1 %v352_v13 }
  0x72   :  { %596 = vmatprep.subr.mxu1 %v712_v0 }
  0x73   :  { %597 = vmatpush3.msra.mxu1 %v351_v14 }
  0x74   :  { %598 = vmatprep.subr.mxu1 %v712_v0 }
  0x75   :  { %599 = vmatpush3.msra.mxu1 %v350_v18 }
  0x76   :  { %600 = vmatprep.subr.mxu1 %v712_v0 }
  0x77   :  { %601 = vmatpush3.msra.mxu1 %v349_v19 }
  0x78   :  { %602 = vmatprep.subr.mxu1 %v712_v0 }
  0x79   :  { %603 = vmatpush3.msra.mxu1 %v348_v20 }
  0x7a   :  { %604 = vmatprep.subr.mxu1 %v712_v0 }
  0x7b   :  { %605 = vmatpush3.msra.mxu1 %v347_v21 }
  0xf3   :  { %v62_v32 = vpop.xlane.xlu0 %61 }
  0xf4   :  { %v63_v0 = vmul.f32 0.1, %v62_v32 }
 0x10a   :  { %v178_v15 = vpop.f32.mrf.mxu0 }
 0x10b   :  { %vm253_vm1 = vcmp.ge.f32.partialorder %v178_v15, 0.0  ;;  %v254_v16 = vmul.f32 0.05, %v178_v15 }
 0x10c   :  { %v180_v25 = vpop.f32.mrf.mxu0 }
 0x10d   :  { %v255_v17 = vsel %vm253_vm1, %v178_v15, %v254_v16 }
 0x10e   :  { %572 = vmatmul.mubr.f32.vlgmr.msra.gmra.mxu0 %v255_v17 }
 0x11a   :  { %v249_v23 = vpop.f32.mrf.mxu1 }
 0x11c   :  { %v538_v24 = vpop.f32.mrf.mxu1 }
 0x1ce   :  { %v338_v26 = vpop.f32.mrf.mxu0 }
 0x1cf   :  { %v342_v27 = vmul.f32 0.05, %v338_v26 }
 0x1d0   :  { %v573_v28 = vpop.f32.mrf.mxu0 }
 0x1d1   :  { %v343_v29 = vadd.f32 %v342_v27, %v180_v25 }
 0x1d3   :  { %v345_v30 = vmul.f32 0.05, %v343_v29  ;;  %vm344_vm2 = vcmp.ge.f32.partialorder %v343_v29, 0.0 }
 0x1d5   :  { %v346_v31 = vsel %vm344_vm2, %v343_v29, %v345_v30 }
 0x1d6   :  { %607 = vmatmul.mubr.f32.vlgmr.msra.gmra.mxu1 %v346_v31 }
 0x296   :  { %v429_v34 = vpop.f32.mrf.mxu1 }
 0x297   :  { %v433_v35 = vadd.f32 %v429_v34, %v249_v23 }
 0x298   :  { %v608_v36 = vpop.f32.mrf.mxu1 }
 0x299   :  { %v434_v33 = vmax.f32 %v433_v35, 0.0 }
 0x29b   :  { %v435_v37 = vadd.f32 %v434_v33, %v63_v0 }
 0x29d   :  { %436 = vst [vmem:[#allocation8] sm:$0xff] %v435_v37 }
 0x29e   :  { %690 = shalt.err (!%p687_p5)
}
 0x29f   :  { %446 = dma.vmem_to_hbm [thread:$0]  %s444_s7, 128, %s820_s4, [#allocation4]  }
 0x2a0   :  { %703 = dma.done.wait [#allocation4], 128  }
 0x2a1   :  { %704 = vsyncadd [#allocation4], 4294967168 }
 0x2a2   :  { %450 = vsyncpa [#allocation3], 1 }
 0x2a3   :  { %451 = vsyncpa [#allocation6], 1 }
 0x2a4   :  { %452 = vsyncpa [#allocation4], 1 }

</bundles_post_ra>
